<compile_context>
chip_gen: v6e
topology: v6e:2x2x1
jax: 0.10.0
libtpu: 0.0.40
codegen_flags: <defaults>
</compile_context>

<pallas_src>
import functools

import jax
import jax.numpy as jnp
from jax.experimental import pallas as pl
from jax.experimental.pallas import tpu as pltpu

# ---- Hyper-parameters mirroring the encoder attributes used by Actor ----
OBS_SIZE = 256                    # encoder.observation_tensor_size
ENTITY_EMB = 16                   # encoder.entity_embedding_size (= operand_representation_size)
THEOREM_EMB = 16                  # encoder.theorem_embedding_size
ROWS = OBS_SIZE // ENTITY_EMB     # 16 ; state_tensor is (ROWS, ENTITY_EMB)
THEOREM_MAX = 8                   # encoder.theorem_maxsize
OPERAND_MAX = 8                   # encoder.theorem_operand_maxsize
ENTITY_MAX = 16                   # encoder.entity_maxsize
N_THEOREMS = 6                    # len(encoder.theorems)
N_ENTITIES = 10                   # len(encoder.prover.proof.entities)
INPUT_NO = 3                      # theorem.input_no

_NEG = -1e30                      # finite filler for masked row-max


def _full_spec(shape):
    # full-array block (block == array satisfies the (8,128) rule)
    return pl.BlockSpec(shape, lambda i: (0,) * len(shape))


# --------------------------- fused Actor kernel ---------------------------
def _actor_kernel(n_theorems, n_entities,
                  xf_ref,      # (1, 256)  f32   state.view(-1) as a row
                  st_ref,      # (16, 16)  f32   state_tensor
                  temb_ref,    # (1, 16)   f32   theorem embedding
                  wt12_ref,    # (256,384) bf16  [w1 | w2] (fan_in, fan_out)
                  wts_ref,     # (192, 64) f32   w3 rows 0:128, w4 rows 128:192
                  wf_ref,      # (24, 128) f32   w5 rows 0:16, sp4 rows 16:18 (zero-padded cols)
                  wop_ref,     # (88, 32)  f32   bwT/fp1/fp2 (out,in) + sp1/sp2/sp3 (in,out)
                  br_ref,      # (9, 256)  f32   row-biases (zero padded)
                  bc_ref,      # (56, 1)   f32   column-biases for the transposed stack
                  out_ref):    # (16, 128) f32   rows 0:8 operand probs, rows 8:16 theorem probs
    f32 = jnp.float32

    # ---------------- theorem chooser (5-layer MLP + masked softmax) ----------------
    x = xf_ref[...]                                                     # (1, 256)
    h = jnp.dot(x.astype(jnp.bfloat16), wt12_ref[:, 0:256],
                preferred_element_type=f32) + br_ref[0:1, 0:256]
    h = jnp.maximum(h, 0.0)
    h = jnp.dot(h.astype(jnp.bfloat16), wt12_ref[:, 256:384],
                preferred_element_type=f32) + br_ref[1:2, 0:128]
    h = jnp.maximum(h, 0.0)
    h = jnp.dot(h, wts_ref[0:128, 0:64], preferred_element_type=f32) + br_ref[2:3, 0:64]
    h = jnp.maximum(h, 0.0)
    h = jnp.dot(h, wts_ref[128:192, 0:16], preferred_element_type=f32) + br_ref[3:4, 0:16]
    h = jnp.maximum(h, 0.0)
    th_logits = jnp.dot(h, wf_ref[0:16, :], preferred_element_type=f32) + br_ref[4:5, 0:128]

    col = jax.lax.broadcasted_iota(jnp.int32, th_logits.shape, 1)
    mask = col < n_theorems                                             # == narrow(0,0,n_theorems)
    m = jnp.max(jnp.where(mask, th_logits, _NEG), axis=1, keepdims=True)
    e = jnp.where(mask, jnp.exp(th_logits - m), 0.0)
    th_probs = e / jnp.sum(e, axis=1, keepdims=True)                    # (1, 128)

    # ------------- bilinear + operand choosers (transposed orientation) -------------
    st = st_ref[...]                                                    # (ROWS, ENTITY_EMB)
    temb = temb_ref[...]                                                # (1, ENTITY_EMB)
    # nn.Bilinear with in2_features == 1:
    #   y[n, o] = (sum_i state[i, n] * A[o, i]) * temb[0, n] + b[o]
    # fold temb into state columns, then contract with A stored as (out, in):
    scaled = st * temb                                                  # scaled[i,n] = st[i,n]*temb[0,n]
    yT = jnp.dot(wop_ref[0:32, 0:16], scaled,
                 preferred_element_type=f32) + bc_ref[0:32, :]          # (32, 16) = y.T
    a = jnp.maximum(yT, 0.0)                                            # first_part: ReLU
    a = jnp.dot(wop_ref[32:48, 0:32], a,
                preferred_element_type=f32) + bc_ref[32:48, :]          # (16, 16)
    a = jnp.maximum(a, 0.0)
    a = jnp.dot(wop_ref[48:56, 0:16], a,
                preferred_element_type=f32) + bc_ref[48:56, :]          # (8, 16)
    z = jnp.maximum(a, 0.0)                                             # == torch `.transpose(0,1)` output

    h2 = jnp.dot(z, wop_ref[56:72, 0:8], preferred_element_type=f32) + br_ref[5:6, 0:8]
    h2 = jnp.maximum(h2, 0.0)
    h2 = jnp.dot(h2, wop_ref[72:80, 0:4], preferred_element_type=f32) + br_ref[6:7, 0:4]
    h2 = jnp.maximum(h2, 0.0)
    h2 = jnp.dot(h2, wop_ref[80:84, 0:2], preferred_element_type=f32) + br_ref[7:8, 0:2]
    h2 = jnp.maximum(h2, 0.0)
    op_logits = jnp.dot(h2, wf_ref[16:18, :], preferred_element_type=f32) + br_ref[8:9, 0:128]

    col2 = jax.lax.broadcasted_iota(jnp.int32, op_logits.shape, 1)
    mask2 = col2 < n_entities                                           # == narrow(1,0,n_entities)
    m2 = jnp.max(jnp.where(mask2, op_logits, _NEG), axis=1, keepdims=True)
    e2 = jnp.where(mask2, jnp.exp(op_logits - m2), 0.0)
    op_probs = e2 / jnp.sum(e2, axis=1, keepdims=True)                  # (8, 128)

    # ---------------- single lane-dense output slab (two aligned full-width stores) ----------------
    out_ref[0:8, :] = op_probs                                          # rows 0:8  : operand probs
    out_ref[8:16, :] = jnp.broadcast_to(th_probs, (8, 128))             # rows 8:16 : theorem probs


# ------------------------------- wrapper -------------------------------
@jax.jit
def actor_forward(state_tensor, theorem_embedded, packed):
    x_flat = state_tensor.reshape(1, OBS_SIZE)     # state_tensor.view(-1); fused into the jit
    args = (x_flat, state_tensor, theorem_embedded,
            packed["wt12"], packed["wt_small"], packed["w_final"],
            packed["wop"], packed["bias_rows"], packed["bias_cols"])

    out = pl.pallas_call(
        functools.partial(_actor_kernel, N_THEOREMS, N_ENTITIES),
        grid=(1,),
        in_specs=[_full_spec(a.shape) for a in args],
        out_specs=_full_spec((16, 128)),
        out_shape=jax.ShapeDtypeStruct((16, 128), jnp.float32),
        compiler_params=pltpu.CompilerParams(dimension_semantics=("arbitrary",)),
    )(*args)

    theorem_choice_tensor = out[8, :N_THEOREMS]                     # narrow done via mask in-kernel
    operands_choice_tensor = out[:INPUT_NO, :N_ENTITIES]            # narrow(dim=0) is a row slice
    return theorem_choice_tensor, operands_choice_tensor


# ----------------------------- parameters -----------------------------
def init_packed_params(key):
    keys = iter(jax.random.split(key, 24))

    def u(shape, fan_in):
        b = 1.0 / float(fan_in) ** 0.5
        return jax.random.uniform(next(keys), shape, jnp.float32, -b, b)

    # theorem_chooser: weights stored (fan_in, fan_out)
    w1 = u((256, 256), 256); b1 = u((256,), 256)
    w2 = u((256, 128), 256); b2 = u((128,), 256)
    w3 = u((128, 64), 128);  b3 = u((64,), 128)
    w4 = u((64, 16), 64);    b4 = u((16,), 64)
    w5 = u((16, 8), 16);     b5 = u((8,), 16)

    # Bilinear(in1=ROWS, in2=1, out=32): weight stored (out, in1) (torch layout, squeezed)
    bw = u((32, 16), ROWS);  bbl = u((32,), ROWS)
    # first_part: stored (out, in) — used as LHS in the transposed-orientation path
    fp1 = u((16, 32), 32);   fp1b = u((16,), 32)
    fp2 = u((8, 16), 16);    fp2b = u((8,), 16)
    # second_part: stored (in, out)
    sp1 = u((16, 8), 16);    sp1b = u((8,), 16)
    sp2 = u((8, 4), 8);      sp2b = u((4,), 8)
    sp3 = u((4, 2), 4);      sp3b = u((2,), 4)
    sp4 = u((2, 16), 2);     sp4b = u((16,), 2)

    # --- pack into VMEM slabs ---
    wt12 = jnp.concatenate([w1, w2], axis=1).astype(jnp.bfloat16)            # (256, 384) bf16

    wt_small = jnp.zeros((192, 64), jnp.float32)
    wt_small = wt_small.at[0:128, 0:64].set(w3).at[128:192, 0:16].set(w4)    # (192, 64)

    w_final = jnp.zeros((24, 128), jnp.float32)                              # zero-padded to 128 cols
    w_final = w_final.at[0:16, 0:8].set(w5).at[16:18, 0:16].set(sp4)

    wop = jnp.zeros((88, 32), jnp.float32)
    wop = (wop.at[0:32, 0:16].set(bw)
              .at[32:48, 0:32].set(fp1)
              .at[48:56, 0:16].set(fp2)
              .at[56:72, 0:8].set(sp1)
              .at[72:80, 0:4].set(sp2)
              .at[80:84, 0:2].set(sp3))

    bias_rows = jnp.zeros((9, 256), jnp.float32)
    bias_rows = (bias_rows.at[0, 0:256].set(b1)
                          .at[1, 0:128].set(b2)
                          .at[2, 0:64].set(b3)
                          .at[3, 0:16].set(b4)
                          .at[4, 0:8].set(b5)
                          .at[5, 0:8].set(sp1b)
                          .at[6, 0:4].set(sp2b)
                          .at[7, 0:2].set(sp3b)
                          .at[8, 0:16].set(sp4b))

    bias_cols = jnp.zeros((56, 1), jnp.float32)
    bias_cols = (bias_cols.at[0:32, 0].set(bbl)
                          .at[32:48, 0].set(fp1b)
                          .at[48:56, 0].set(fp2b))

    return dict(wt12=wt12, wt_small=wt_small, w_final=w_final, wop=wop,
                bias_rows=bias_rows, bias_cols=bias_cols)


if __name__ == "__main__":
    key = jax.random.PRNGKey(0)
    k_state, k_theorem, k_params = jax.random.split(key, 3)

    # synthetic encoder outputs (stand-ins for encode_observation / encode_theorem)
    state_tensor = jax.random.normal(k_state, (ROWS, ENTITY_EMB), jnp.float32)     # (16, 16)
    theorem_embedded = jax.random.normal(k_theorem, (1, THEOREM_EMB), jnp.float32)  # (1, 16)
    packed = init_packed_params(k_params)

    theorem_probs, operand_probs = actor_forward(state_tensor, theorem_embedded, packed)
    (theorem_probs, operand_probs) = jax.block_until_ready((theorem_probs, operand_probs))

    assert theorem_probs.shape == (N_THEOREMS,)
    assert operand_probs.shape == (INPUT_NO, N_ENTITIES)
    assert abs(float(jnp.sum(theorem_probs)) - 1.0) < 1e-4
    assert bool(jnp.all(jnp.abs(jnp.sum(operand_probs, axis=1) - 1.0) < 1e-4))
    print("KERNEL_OK")
</pallas_src>

<mosaic_0001>
module attributes {stable_mosaic.version = 11 : i64} {
  func.func @_actor_kernel(%arg0: i32, %arg1: memref<1x256xf32, #tpu.memory_space<vmem>>, %arg2: memref<16x16xf32, #tpu.memory_space<vmem>>, %arg3: memref<1x16xf32, #tpu.memory_space<vmem>>, %arg4: memref<256x384xbf16, #tpu.memory_space<vmem>>, %arg5: memref<192x64xf32, #tpu.memory_space<vmem>>, %arg6: memref<24x128xf32, #tpu.memory_space<vmem>>, %arg7: memref<88x32xf32, #tpu.memory_space<vmem>>, %arg8: memref<9x256xf32, #tpu.memory_space<vmem>>, %arg9: memref<56x1xf32, #tpu.memory_space<vmem>>, %arg10: memref<16x128xf32, #tpu.memory_space<vmem>>) attributes {dimension_semantics = [#tpu.dimension_semantics<arbitrary>], iteration_bounds = array<i64: 1>, scalar_prefetch = 0 : i64, scratch_operands = 0 : i64, tpu.core_type = #tpu.core_type<tc>, window_params = [{pipeline_mode = #tpu.pipeline_mode<synchronous>, transform_indices = @transform_0, window_bounds = array<i64: 1, 256>}, {pipeline_mode = #tpu.pipeline_mode<synchronous>, transform_indices = @transform_1, window_bounds = array<i64: 16, 16>}, {pipeline_mode = #tpu.pipeline_mode<synchronous>, transform_indices = @transform_2, window_bounds = array<i64: 1, 16>}, {pipeline_mode = #tpu.pipeline_mode<synchronous>, transform_indices = @transform_3, window_bounds = array<i64: 256, 384>}, {pipeline_mode = #tpu.pipeline_mode<synchronous>, transform_indices = @transform_4, window_bounds = array<i64: 192, 64>}, {pipeline_mode = #tpu.pipeline_mode<synchronous>, transform_indices = @transform_5, window_bounds = array<i64: 24, 128>}, {pipeline_mode = #tpu.pipeline_mode<synchronous>, transform_indices = @transform_6, window_bounds = array<i64: 88, 32>}, {pipeline_mode = #tpu.pipeline_mode<synchronous>, transform_indices = @transform_7, window_bounds = array<i64: 9, 256>}, {pipeline_mode = #tpu.pipeline_mode<synchronous>, transform_indices = @transform_8, window_bounds = array<i64: 56, 1>}, {pipeline_mode = #tpu.pipeline_mode<synchronous>, transform_indices = @transform_9, window_bounds = array<i64: 16, 128>}]} {
    %c0 = arith.constant 0 : index
    %c0_0 = arith.constant 0 : index
    %0 = vector.load %arg1[%c0, %c0_0] : memref<1x256xf32, #tpu.memory_space<vmem>>, vector<1x256xf32>
    %1 = arith.truncf %0 : vector<1x256xf32> to vector<1x256xbf16>
    %c0_1 = arith.constant 0 : index
    %c0_2 = arith.constant 0 : index
    %2 = vector.load %arg4[%c0_1, %c0_2] : memref<256x384xbf16, #tpu.memory_space<vmem>>, vector<256x256xbf16>
    %cst = arith.constant dense<0.000000e+00> : vector<1x256xf32>
    %3 = tpu.matmul %1, %2, %cst {dimension_numbers = #tpu.dot_dimension_numbers<[1], [0], [0], [1], [0, 0, 1, 1], [], []>} : vector<1x256xbf16>, vector<256x256xbf16>, vector<1x256xf32> -> vector<1x256xf32>
    %c0_3 = arith.constant 0 : index
    %c0_4 = arith.constant 0 : index
    %4 = vector.load %arg8[%c0_3, %c0_4] : memref<9x256xf32, #tpu.memory_space<vmem>>, vector<1x256xf32>
    %5 = arith.addf %3, %4 : vector<1x256xf32>
    %cst_5 = arith.constant 0.000000e+00 : f32
    %6 = vector.broadcast %cst_5 : f32 to vector<1x256xf32>
    %7 = arith.maximumf %5, %6 : vector<1x256xf32>
    %8 = arith.truncf %7 : vector<1x256xf32> to vector<1x256xbf16>
    %c0_6 = arith.constant 0 : index
    %c256 = arith.constant 256 : index
    %9 = vector.load %arg4[%c0_6, %c256] : memref<256x384xbf16, #tpu.memory_space<vmem>>, vector<256x128xbf16>
    %cst_7 = arith.constant dense<0.000000e+00> : vector<1x128xf32>
    %10 = tpu.matmul %8, %9, %cst_7 {dimension_numbers = #tpu.dot_dimension_numbers<[1], [0], [0], [1], [0, 0, 1, 1], [], []>} : vector<1x256xbf16>, vector<256x128xbf16>, vector<1x128xf32> -> vector<1x128xf32>
    %c1 = arith.constant 1 : index
    %c0_8 = arith.constant 0 : index
    %11 = vector.load %arg8[%c1, %c0_8] : memref<9x256xf32, #tpu.memory_space<vmem>>, vector<1x128xf32>
    %12 = arith.addf %10, %11 : vector<1x128xf32>
    %cst_9 = arith.constant 0.000000e+00 : f32
    %13 = vector.broadcast %cst_9 : f32 to vector<1x128xf32>
    %14 = arith.maximumf %12, %13 : vector<1x128xf32>
    %c0_10 = arith.constant 0 : index
    %c0_11 = arith.constant 0 : index
    %15 = vector.load %arg5[%c0_10, %c0_11] : memref<192x64xf32, #tpu.memory_space<vmem>>, vector<128x64xf32>
    %cst_12 = arith.constant dense<0.000000e+00> : vector<1x64xf32>
    %16 = tpu.matmul %14, %15, %cst_12 {dimension_numbers = #tpu.dot_dimension_numbers<[1], [0], [0], [1], [0, 0, 1, 1], [], []>} : vector<1x128xf32>, vector<128x64xf32>, vector<1x64xf32> -> vector<1x64xf32>
    %c2 = arith.constant 2 : index
    %c0_13 = arith.constant 0 : index
    %17 = vector.load %arg8[%c2, %c0_13] : memref<9x256xf32, #tpu.memory_space<vmem>>, vector<1x64xf32>
    %18 = arith.addf %16, %17 : vector<1x64xf32>
    %cst_14 = arith.constant 0.000000e+00 : f32
    %19 = vector.broadcast %cst_14 : f32 to vector<1x64xf32>
    %20 = arith.maximumf %18, %19 : vector<1x64xf32>
    %c128 = arith.constant 128 : index
    %c0_15 = arith.constant 0 : index
    %21 = vector.load %arg5[%c128, %c0_15] : memref<192x64xf32, #tpu.memory_space<vmem>>, vector<64x16xf32>
    %cst_16 = arith.constant dense<0.000000e+00> : vector<1x16xf32>
    %22 = tpu.matmul %20, %21, %cst_16 {dimension_numbers = #tpu.dot_dimension_numbers<[1], [0], [0], [1], [0, 0, 1, 1], [], []>} : vector<1x64xf32>, vector<64x16xf32>, vector<1x16xf32> -> vector<1x16xf32>
    %c3 = arith.constant 3 : index
    %c0_17 = arith.constant 0 : index
    %23 = vector.load %arg8[%c3, %c0_17] : memref<9x256xf32, #tpu.memory_space<vmem>>, vector<1x16xf32>
    %24 = arith.addf %22, %23 : vector<1x16xf32>
    %cst_18 = arith.constant 0.000000e+00 : f32
    %25 = vector.broadcast %cst_18 : f32 to vector<1x16xf32>
    %26 = arith.maximumf %24, %25 : vector<1x16xf32>
    %c0_19 = arith.constant 0 : index
    %c0_20 = arith.constant 0 : index
    %27 = vector.load %arg6[%c0_19, %c0_20] : memref<24x128xf32, #tpu.memory_space<vmem>>, vector<16x128xf32>
    %cst_21 = arith.constant dense<0.000000e+00> : vector<1x128xf32>
    %28 = tpu.matmul %26, %27, %cst_21 {dimension_numbers = #tpu.dot_dimension_numbers<[1], [0], [0], [1], [0, 0, 1, 1], [], []>} : vector<1x16xf32>, vector<16x128xf32>, vector<1x128xf32> -> vector<1x128xf32>
    %c4 = arith.constant 4 : index
    %c0_22 = arith.constant 0 : index
    %29 = vector.load %arg8[%c4, %c0_22] : memref<9x256xf32, #tpu.memory_space<vmem>>, vector<1x128xf32>
    %30 = arith.addf %28, %29 : vector<1x128xf32>
    %31 = tpu.iota {dimensions = array<i32: 1>} : vector<1x128xi32>
    %c6_i32 = arith.constant 6 : i32
    %32 = vector.broadcast %c6_i32 : i32 to vector<1x128xi32>
    %33 = arith.cmpi slt, %31, %32 : vector<1x128xi32>
    %cst_23 = arith.constant -1.000000e+30 : f32
    %34 = vector.broadcast %cst_23 : f32 to vector<1x128xf32>
    %35 = arith.select %33, %30, %34 : vector<1x128xi1>, vector<1x128xf32>
    %cst_24 = arith.constant dense<0xFF800000> : vector<1xf32>
    %36 = vector.multi_reduction <maximumf>, %35, %cst_24 [1] : vector<1x128xf32> to vector<1xf32>
    %37 = vector.shape_cast %36 : vector<1xf32> to vector<1x1xf32>
    %38 = vector.broadcast %37 : vector<1x1xf32> to vector<1x128xf32>
    %39 = arith.subf %30, %38 : vector<1x128xf32>
    %40 = math.exp %39 : vector<1x128xf32>
    %cst_25 = arith.constant 0.000000e+00 : f32
    %41 = vector.broadcast %cst_25 : f32 to vector<1x128xf32>
    %42 = arith.select %33, %40, %41 : vector<1x128xi1>, vector<1x128xf32>
    %cst_26 = arith.constant dense<0.000000e+00> : vector<1xf32>
    %43 = vector.multi_reduction <add>, %42, %cst_26 [1] : vector<1x128xf32> to vector<1xf32>
    %44 = vector.shape_cast %43 : vector<1xf32> to vector<1x1xf32>
    %45 = vector.broadcast %44 : vector<1x1xf32> to vector<1x128xf32>
    %46 = arith.divf %42, %45 : vector<1x128xf32>
    %c0_27 = arith.constant 0 : index
    %c0_28 = arith.constant 0 : index
    %47 = vector.load %arg2[%c0_27, %c0_28] : memref<16x16xf32, #tpu.memory_space<vmem>>, vector<16x16xf32>
    %c0_29 = arith.constant 0 : index
    %c0_30 = arith.constant 0 : index
    %48 = vector.load %arg3[%c0_29, %c0_30] : memref<1x16xf32, #tpu.memory_space<vmem>>, vector<1x16xf32>
    %49 = vector.broadcast %48 : vector<1x16xf32> to vector<16x16xf32>
    %50 = arith.mulf %47, %49 : vector<16x16xf32>
    %c0_31 = arith.constant 0 : index
    %c0_32 = arith.constant 0 : index
    %51 = vector.load %arg7[%c0_31, %c0_32] : memref<88x32xf32, #tpu.memory_space<vmem>>, vector<32x16xf32>
    %cst_33 = arith.constant dense<0.000000e+00> : vector<32x16xf32>
    %52 = tpu.matmul %51, %50, %cst_33 {dimension_numbers = #tpu.dot_dimension_numbers<[1], [0], [0], [1], [0, 0, 1, 1], [], []>} : vector<32x16xf32>, vector<16x16xf32>, vector<32x16xf32> -> vector<32x16xf32>
    %c0_34 = arith.constant 0 : index
    %c0_35 = arith.constant 0 : index
    %53 = vector.load %arg9[%c0_34, %c0_35] : memref<56x1xf32, #tpu.memory_space<vmem>>, vector<32x1xf32>
    %54 = vector.broadcast %53 : vector<32x1xf32> to vector<32x16xf32>
    %55 = arith.addf %52, %54 : vector<32x16xf32>
    %cst_36 = arith.constant 0.000000e+00 : f32
    %56 = vector.broadcast %cst_36 : f32 to vector<32x16xf32>
    %57 = arith.maximumf %55, %56 : vector<32x16xf32>
    %c32 = arith.constant 32 : index
    %c0_37 = arith.constant 0 : index
    %58 = vector.load %arg7[%c32, %c0_37] : memref<88x32xf32, #tpu.memory_space<vmem>>, vector<16x32xf32>
    %cst_38 = arith.constant dense<0.000000e+00> : vector<16x16xf32>
    %59 = tpu.matmul %58, %57, %cst_38 {dimension_numbers = #tpu.dot_dimension_numbers<[1], [0], [0], [1], [0, 0, 1, 1], [], []>} : vector<16x32xf32>, vector<32x16xf32>, vector<16x16xf32> -> vector<16x16xf32>
    %c32_39 = arith.constant 32 : index
    %c0_40 = arith.constant 0 : index
    %60 = vector.load %arg9[%c32_39, %c0_40] : memref<56x1xf32, #tpu.memory_space<vmem>>, vector<16x1xf32>
    %61 = vector.broadcast %60 : vector<16x1xf32> to vector<16x16xf32>
    %62 = arith.addf %59, %61 : vector<16x16xf32>
    %cst_41 = arith.constant 0.000000e+00 : f32
    %63 = vector.broadcast %cst_41 : f32 to vector<16x16xf32>
    %64 = arith.maximumf %62, %63 : vector<16x16xf32>
    %c48 = arith.constant 48 : index
    %c0_42 = arith.constant 0 : index
    %65 = vector.load %arg7[%c48, %c0_42] : memref<88x32xf32, #tpu.memory_space<vmem>>, vector<8x16xf32>
    %cst_43 = arith.constant dense<0.000000e+00> : vector<8x16xf32>
    %66 = tpu.matmul %65, %64, %cst_43 {dimension_numbers = #tpu.dot_dimension_numbers<[1], [0], [0], [1], [0, 0, 1, 1], [], []>} : vector<8x16xf32>, vector<16x16xf32>, vector<8x16xf32> -> vector<8x16xf32>
    %c48_44 = arith.constant 48 : index
    %c0_45 = arith.constant 0 : index
    %67 = vector.load %arg9[%c48_44, %c0_45] : memref<56x1xf32, #tpu.memory_space<vmem>>, vector<8x1xf32>
    %68 = vector.broadcast %67 : vector<8x1xf32> to vector<8x16xf32>
    %69 = arith.addf %66, %68 : vector<8x16xf32>
    %cst_46 = arith.constant 0.000000e+00 : f32
    %70 = vector.broadcast %cst_46 : f32 to vector<8x16xf32>
    %71 = arith.maximumf %69, %70 : vector<8x16xf32>
    %c56 = arith.constant 56 : index
    %c0_47 = arith.constant 0 : index
    %72 = vector.load %arg7[%c56, %c0_47] : memref<88x32xf32, #tpu.memory_space<vmem>>, vector<16x8xf32>
    %cst_48 = arith.constant dense<0.000000e+00> : vector<8x8xf32>
    %73 = tpu.matmul %71, %72, %cst_48 {dimension_numbers = #tpu.dot_dimension_numbers<[1], [0], [0], [1], [0, 0, 1, 1], [], []>} : vector<8x16xf32>, vector<16x8xf32>, vector<8x8xf32> -> vector<8x8xf32>
    %c5 = arith.constant 5 : index
    %c0_49 = arith.constant 0 : index
    %74 = vector.load %arg8[%c5, %c0_49] : memref<9x256xf32, #tpu.memory_space<vmem>>, vector<1x8xf32>
    %75 = vector.broadcast %74 : vector<1x8xf32> to vector<8x8xf32>
    %76 = arith.addf %73, %75 : vector<8x8xf32>
    %cst_50 = arith.constant 0.000000e+00 : f32
    %77 = vector.broadcast %cst_50 : f32 to vector<8x8xf32>
    %78 = arith.maximumf %76, %77 : vector<8x8xf32>
    %c72 = arith.constant 72 : index
    %c0_51 = arith.constant 0 : index
    %79 = vector.load %arg7[%c72, %c0_51] : memref<88x32xf32, #tpu.memory_space<vmem>>, vector<8x4xf32>
    %cst_52 = arith.constant dense<0.000000e+00> : vector<8x4xf32>
    %80 = tpu.matmul %78, %79, %cst_52 {dimension_numbers = #tpu.dot_dimension_numbers<[1], [0], [0], [1], [0, 0, 1, 1], [], []>} : vector<8x8xf32>, vector<8x4xf32>, vector<8x4xf32> -> vector<8x4xf32>
    %c6 = arith.constant 6 : index
    %c0_53 = arith.constant 0 : index
    %81 = vector.load %arg8[%c6, %c0_53] : memref<9x256xf32, #tpu.memory_space<vmem>>, vector<1x4xf32>
    %82 = vector.broadcast %81 : vector<1x4xf32> to vector<8x4xf32>
    %83 = arith.addf %80, %82 : vector<8x4xf32>
    %cst_54 = arith.constant 0.000000e+00 : f32
    %84 = vector.broadcast %cst_54 : f32 to vector<8x4xf32>
    %85 = arith.maximumf %83, %84 : vector<8x4xf32>
    %c80 = arith.constant 80 : index
    %c0_55 = arith.constant 0 : index
    %86 = vector.load %arg7[%c80, %c0_55] : memref<88x32xf32, #tpu.memory_space<vmem>>, vector<4x2xf32>
    %cst_56 = arith.constant dense<0.000000e+00> : vector<8x2xf32>
    %87 = tpu.matmul %85, %86, %cst_56 {dimension_numbers = #tpu.dot_dimension_numbers<[1], [0], [0], [1], [0, 0, 1, 1], [], []>} : vector<8x4xf32>, vector<4x2xf32>, vector<8x2xf32> -> vector<8x2xf32>
    %c7 = arith.constant 7 : index
    %c0_57 = arith.constant 0 : index
    %88 = vector.load %arg8[%c7, %c0_57] : memref<9x256xf32, #tpu.memory_space<vmem>>, vector<1x2xf32>
    %89 = vector.broadcast %88 : vector<1x2xf32> to vector<8x2xf32>
    %90 = arith.addf %87, %89 : vector<8x2xf32>
    %cst_58 = arith.constant 0.000000e+00 : f32
    %91 = vector.broadcast %cst_58 : f32 to vector<8x2xf32>
    %92 = arith.maximumf %90, %91 : vector<8x2xf32>
    %c16 = arith.constant 16 : index
    %c0_59 = arith.constant 0 : index
    %93 = vector.load %arg6[%c16, %c0_59] : memref<24x128xf32, #tpu.memory_space<vmem>>, vector<2x128xf32>
    %cst_60 = arith.constant dense<0.000000e+00> : vector<8x128xf32>
    %94 = tpu.matmul %92, %93, %cst_60 {dimension_numbers = #tpu.dot_dimension_numbers<[1], [0], [0], [1], [0, 0, 1, 1], [], []>} : vector<8x2xf32>, vector<2x128xf32>, vector<8x128xf32> -> vector<8x128xf32>
    %c8 = arith.constant 8 : index
    %c0_61 = arith.constant 0 : index
    %95 = vector.load %arg8[%c8, %c0_61] : memref<9x256xf32, #tpu.memory_space<vmem>>, vector<1x128xf32>
    %96 = vector.broadcast %95 : vector<1x128xf32> to vector<8x128xf32>
    %97 = arith.addf %94, %96 : vector<8x128xf32>
    %98 = tpu.iota {dimensions = array<i32: 1>} : vector<8x128xi32>
    %c10_i32 = arith.constant 10 : i32
    %99 = vector.broadcast %c10_i32 : i32 to vector<8x128xi32>
    %100 = arith.cmpi slt, %98, %99 : vector<8x128xi32>
    %cst_62 = arith.constant -1.000000e+30 : f32
    %101 = vector.broadcast %cst_62 : f32 to vector<8x128xf32>
    %102 = arith.select %100, %97, %101 : vector<8x128xi1>, vector<8x128xf32>
    %cst_63 = arith.constant dense<0xFF800000> : vector<8xf32>
    %103 = vector.multi_reduction <maximumf>, %102, %cst_63 [1] : vector<8x128xf32> to vector<8xf32>
    %104 = vector.shape_cast %103 : vector<8xf32> to vector<8x1xf32>
    %105 = vector.broadcast %104 : vector<8x1xf32> to vector<8x128xf32>
    %106 = arith.subf %97, %105 : vector<8x128xf32>
    %107 = math.exp %106 : vector<8x128xf32>
    %cst_64 = arith.constant 0.000000e+00 : f32
    %108 = vector.broadcast %cst_64 : f32 to vector<8x128xf32>
    %109 = arith.select %100, %107, %108 : vector<8x128xi1>, vector<8x128xf32>
    %cst_65 = arith.constant dense<0.000000e+00> : vector<8xf32>
    %110 = vector.multi_reduction <add>, %109, %cst_65 [1] : vector<8x128xf32> to vector<8xf32>
    %111 = vector.shape_cast %110 : vector<8xf32> to vector<8x1xf32>
    %112 = vector.broadcast %111 : vector<8x1xf32> to vector<8x128xf32>
    %113 = arith.divf %109, %112 : vector<8x128xf32>
    %c0_66 = arith.constant 0 : index
    %c0_67 = arith.constant 0 : index
    %114 = vector.load %arg10[%c0_66, %c0_67] : memref<16x128xf32, #tpu.memory_space<vmem>>, vector<8x128xf32>
    tpu.vector_store %arg10[%c0_66, %c0_67], %113 {strides = array<i32>} : memref<16x128xf32, #tpu.memory_space<vmem>>, vector<8x128xf32>,
    %115 = vector.shape_cast %46 : vector<1x128xf32> to vector<1x128xf32>
    %116 = vector.broadcast %115 : vector<1x128xf32> to vector<8x128xf32>
    %c8_68 = arith.constant 8 : index
    %c0_69 = arith.constant 0 : index
    %117 = vector.load %arg10[%c8_68, %c0_69] : memref<16x128xf32, #tpu.memory_space<vmem>>, vector<8x128xf32>
    tpu.vector_store %arg10[%c8_68, %c0_69], %116 {strides = array<i32>} : memref<16x128xf32, #tpu.memory_space<vmem>>, vector<8x128xf32>,
    return
  }
  func.func @transform_0(%arg0: i32) -> (i32, i32) {
    %c0_i32 = arith.constant 0 : i32
    %c0_i32_0 = arith.constant 0 : i32
    %c0_i32_1 = arith.constant 0 : i32
    return %c0_i32, %c0_i32_0 : i32, i32
  }
  func.func @transform_1(%arg0: i32) -> (i32, i32) {
    %c0_i32 = arith.constant 0 : i32
    %c0_i32_0 = arith.constant 0 : i32
    %c0_i32_1 = arith.constant 0 : i32
    return %c0_i32, %c0_i32_0 : i32, i32
  }
  func.func @transform_2(%arg0: i32) -> (i32, i32) {
    %c0_i32 = arith.constant 0 : i32
    %c0_i32_0 = arith.constant 0 : i32
    %c0_i32_1 = arith.constant 0 : i32
    return %c0_i32, %c0_i32_0 : i32, i32
  }
  func.func @transform_3(%arg0: i32) -> (i32, i32) {
    %c0_i32 = arith.constant 0 : i32
    %c0_i32_0 = arith.constant 0 : i32
    %c0_i32_1 = arith.constant 0 : i32
    return %c0_i32, %c0_i32_0 : i32, i32
  }
  func.func @transform_4(%arg0: i32) -> (i32, i32) {
    %c0_i32 = arith.constant 0 : i32
    %c0_i32_0 = arith.constant 0 : i32
    %c0_i32_1 = arith.constant 0 : i32
    return %c0_i32, %c0_i32_0 : i32, i32
  }
  func.func @transform_5(%arg0: i32) -> (i32, i32) {
    %c0_i32 = arith.constant 0 : i32
    %c0_i32_0 = arith.constant 0 : i32
    %c0_i32_1 = arith.constant 0 : i32
    return %c0_i32, %c0_i32_0 : i32, i32
  }
  func.func @transform_6(%arg0: i32) -> (i32, i32) {
    %c0_i32 = arith.constant 0 : i32
    %c0_i32_0 = arith.constant 0 : i32
    %c0_i32_1 = arith.constant 0 : i32
    return %c0_i32, %c0_i32_0 : i32, i32
  }
  func.func @transform_7(%arg0: i32) -> (i32, i32) {
    %c0_i32 = arith.constant 0 : i32
    %c0_i32_0 = arith.constant 0 : i32
    %c0_i32_1 = arith.constant 0 : i32
    return %c0_i32, %c0_i32_0 : i32, i32
  }
  func.func @transform_8(%arg0: i32) -> (i32, i32) {
    %c0_i32 = arith.constant 0 : i32
    %c0_i32_0 = arith.constant 0 : i32
    %c0_i32_1 = arith.constant 0 : i32
    return %c0_i32, %c0_i32_0 : i32, i32
  }
  func.func @transform_9(%arg0: i32) -> (i32, i32) {
    %c0_i32 = arith.constant 0 : i32
    %c0_i32_0 = arith.constant 0 : i32
    %c0_i32_1 = arith.constant 0 : i32
    return %c0_i32, %c0_i32_0 : i32, i32
  }
}

</mosaic_0001>

<bundles_post_ra>
// kernel: actor_forward.1
= control target key start
LH: loop header
LB: loop body
LE: loop exit
PB: predicated region body
PF: predicated region fallthrough
CT: control target
= control target key end

     0   :  { %14 = vsyncpa [#allocation3], 0  ;;  %s2275_s0 = inlined_call_operand.vmem [shape: f32[1,256], index: 0, kind: input, shape index: {}]   ;;  %s2276_s1 = inlined_call_operand.hbm [shape: f32[16,16], index: 1, kind: input, shape index: {}]   ;;  %s2277_s2 = inlined_call_operand.vmem [shape: f32[1,16], index: 2, kind: input, shape index: {}]   ;;  %s2278_s3 = inlined_call_operand.vmem [shape: bf16[256,384], index: 3, kind: input, shape index: {}]   ;;  %s2279_s4 = inlined_call_operand.vmem [shape: f32[192,64], index: 4, kind: input, shape index: {}]   ;;  %s2280_s5 = inlined_call_operand.hbm [shape: f32[24,128], index: 5, kind: input, shape index: {}]   ;;  %s2281_s6 = inlined_call_operand.vmem [shape: f32[88,32], index: 6, kind: input, shape index: {}]   ;;  %s2282_s7 = inlined_call_operand.hbm [shape: f32[9,256], index: 7, kind: input, shape index: {}]   ;;  %s2283_s8 = inlined_call_operand.vmem [shape: f32[56,1], index: 8, kind: input, shape index: {}]   ;;  %s2284_s9 = inlined_call_operand.vmem [shape: f32[16,128], index: 9, kind: output, shape index: {}]  }
   0x1   :  { %15 = vsyncpa [#allocation5], 0  ;;  %s1829_s30 = smov [#allocation4]   ;;  %s1830_s11 = smov [#allocation2]  }
   0x2   :  { %s41_s10 = sshll.u32 %s1829_s30, 4  ;;  %s23_s12 = sshll.u32 %s1830_s11, 4  ;;  %s42_s10 = int_to_ptr.vmem [resolvable:$true] %s41_s10  ;;  %s24_s12 = int_to_ptr.vmem [resolvable:$true] %s23_s12 }
   0x3   :  { %s1773_s13 = scalar_lea.vmem %s42_s10, 384  ;;  %p1778_p1 = scmp.lt.s32.totalorder %s42_s10, %s42_s10 }
   0x4   :  { %p1774_p0 = scmp.ne.s32.totalorder %s42_s10, %s1773_s13  ;;  %p1779_p2 = scmp.lt.s32.totalorder %s1773_s13, %s1773_s13 }
   0x6   :  { %p1780_p3 = por %p1779_p2, %p1778_p1 }
   0x8   :  { %p1781_p4 = pnand %p1780_p3, %p1774_p0 }
   0xa   :  { %1784 = shalt.err (!%p1781_p4)
}
   0xb   :  { %s1831_s14 = smov 128   ;;  %s1832_s15 = smov 8  }
   0xc   :  { %47 = dma.hbm_to_vmem [thread:$0]  %s2280_s5, 384, %s42_s10, [#allocation5], %s1831_s14, %s1831_s14, %s1832_s15  }
   0xd   :  { %s1793_s18 = scalar_lea.vmem %s24_s12, 256  ;;  %p1798_p6 = scmp.lt.s32.totalorder %s24_s12, %s24_s12 }
   0xe   :  { %p1794_p5 = scmp.ne.s32.totalorder %s24_s12, %s1793_s18  ;;  %p1799_p7 = scmp.lt.s32.totalorder %s1793_s18, %s1793_s18 }
  0x10   :  { %p1800_p8 = por %p1799_p7, %p1798_p6 }
  0x12   :  { %p1801_p9 = pnand %p1800_p8, %p1794_p5 }
  0x14   :  { %1804 = shalt.err (!%p1801_p9)
}
  0x15   :  { %29 = dma.hbm_to_vmem [thread:$0]  %s2276_s1, 256, %s24_s12, [#allocation3], %s1831_s14, %s1831_s14, %s1832_s15  }
  0x16   :  { %s1833_s21 = smov [#allocation6]  }
  0x17   :  { %s55_s22 = sshll.u32 %s1833_s21, 4  ;;  %s56_s22 = int_to_ptr.vmem [resolvable:$true] %s55_s22 }
  0x18   :  { %s1813_s23 = scalar_lea.vmem %s56_s22, 512  ;;  %p1818_p11 = scmp.lt.s32.totalorder %s56_s22, %s56_s22 }
  0x19   :  { %p1814_p10 = scmp.ne.s32.totalorder %s56_s22, %s1813_s23  ;;  %p1819_p12 = scmp.lt.s32.totalorder %s1813_s23, %s1813_s23 }
  0x1b   :  { %p1820_p13 = por %p1819_p12, %p1818_p11 }
  0x1d   :  { %p1821_p0 = pnand %p1820_p13, %p1814_p10 }
  0x1f   :  { %1824 = shalt.err (!%p1821_p0)
}
  0x20   :  { %s1834_s5 = smov 256   ;;  %s1835_s24 = smov 16  }
  0x21   :  { %61 = dma.hbm_to_vmem [thread:$0]  %s2282_s7, 512, %s56_s22, [#allocation5], %s1834_s5, %s1834_s5, %s1835_s24  }
  0x22   :  { %1825 = dma.done.wait [#allocation3], 256  }
  0x23   :  { %1826 = vsyncadd [#allocation3], 4294967040 }
  0x24   :  { %1827 = dma.done.wait [#allocation5], 896  }
  0x25   :  { %1828 = vsyncadd [#allocation5], 4294966400  ;;  %v1693_v0 = vld [vmem:[%s2278_s3 + $0xac] ss:$12 sps:$4 sm:$0xff]   ;;  %v1695_v1 = vld [vmem:[%s2278_s3 + $0xa8] ss:$12 sps:$4 sm:$0xff]   ;;  %v76_v7 = vlaneseq }
  0x26   :  { %292 = vmatprep.subr.bf16.mxu0 %v1693_v0  ;;  %v1696_v2 = vld [vmem:[%s2278_s3 + $0x94] ss:$12 sps:$4 sm:$0xff]   ;;  %v1698_v3 = vld [vmem:[%s2278_s3 + $0x90] ss:$12 sps:$4 sm:$0xff]   ;;  %v1701_v5 = vld [vmem:[%s2278_s3 + $0x78] ss:$12 sps:$4 sm:$0xff]  }
  0x27   :  { %293 = vmatpush1.bf16.msra.mxu0 %v1695_v1  ;;  %v1699_v4 = vld [vmem:[%s2278_s3 + $0x7c] ss:$12 sps:$4 sm:$0xff]   ;;  %v1702_v6 = vld [vmem:[%s2278_s3 + $0x64] ss:$12 sps:$4 sm:$0xff]   ;;  %v1704_v8 = vld [vmem:[%s2278_s3 + $0x60] ss:$12 sps:$4 sm:$0xff]  }
  0x28   :  { %294 = vmatprep.subr.bf16.mxu0 %v1696_v2  ;;  %v1705_v9 = vld [vmem:[%s2278_s3 + $0x4c] ss:$12 sps:$4 sm:$0xff]   ;;  %v1926_v10 = vshrl.u32 %v76_v7, 7  ;;  %v1707_v11 = vld [vmem:[%s2278_s3 + $0x48] ss:$12 sps:$4 sm:$0xff]   ;;  %v1836_v57 = vmov 0.0  }
  0x29   :  { %v1708_v12 = vld [vmem:[%s2278_s3 + $0x34] ss:$12 sps:$4 sm:$0xff]   ;;  %v1710_v14 = vld [vmem:[%s2278_s3 + $0x30] ss:$12 sps:$4 sm:$0xff]   ;;  %v1713_v16 = vld [vmem:[%s2278_s3 + $0x18] ss:$12 sps:$4 sm:$0xff]  }
  0x2a   :  { %v82_v13 = vsub.s32 1, %v1926_v10  ;;  %v1711_v15 = vld [vmem:[%s2278_s3 + $0x1c] ss:$12 sps:$4 sm:$0xff]   ;;  %v1947_v17 = vld [vmem:[%s2275_s0] sm:$0x3]  ;;  %v2034_v47 = vsub.s32 0, %v1926_v10 }
  0x2b   :  { %295 = vmatpush1.bf16.msra.mxu0 %v1698_v3  ;;  %v1714_v18 = vld [vmem:[%s2278_s3 + $0x4] ss:$12 sps:$4 sm:$0xff]   ;;  %v1745_v25 = vld [vmem:[%s2278_s3 + $0x140] ss:$12 sps:$4 sm:$0xff]   ;;  %v1747_v29 = vld [vmem:[%s2278_s3 + $0x128] ss:$12 sps:$4 sm:$0xff]  }
  0x2c   :  { %296 = vmatprep.subr.bf16.mxu0 %v1699_v4  ;;  %v83_v19 = vrot.slane %v1947_v17, %v82_v13  ;;  %v1741_v20 = vld [vmem:[%s2278_s3 + $0x170] ss:$12 sps:$4 sm:$0xff]   ;;  %v1743_v23 = vld [vmem:[%s2278_s3 + $0x158] ss:$12 sps:$4 sm:$0xff]   ;;  %v1716_v26 = vld [vmem:[%s2278_s3] ss:$12 sps:$4 sm:$0xff]   ;;  %v79_v50 = vrot.slane %v1947_v17, %v2034_v47 }
  0x2d   :  { %v1742_v21 = vld [vmem:[%s2278_s3 + $0xb0] ss:$12 sps:$4 sm:$0xff]   ;;  %1495 = vmatprep.subr.bf16.mxu1 %v1741_v20  ;;  %v1744_v24 = vld [vmem:[%s2278_s3 + $0x98] ss:$12 sps:$4 sm:$0xff]   ;;  %v1746_v28 = vld [vmem:[%s2278_s3 + $0x80] ss:$12 sps:$4 sm:$0xff]  }
  0x2e   :  { %v87_v22 = vpack.c.bf16 %v83_v19, %v83_v19  ;;  %1496 = vmatpush3.bf16.msra.mxu1 %v1742_v21  ;;  %v1717_v27 = vld [vmem:[%s2278_s3 + $0x16c] ss:$12 sps:$4 sm:$0xff]   ;;  %v1719_v30 = vld [vmem:[%s2278_s3 + $0x168] ss:$12 sps:$4 sm:$0xff]   ;;  %v1722_v32 = vld [vmem:[%s2278_s3 + $0x150] ss:$12 sps:$4 sm:$0xff]   ;;  %v86_v52 = vpack.c.bf16 %v79_v50, %v79_v50 }
  0x2f   :  { %297 = vmatpush1.bf16.msra.mxu0 %v1701_v5  ;;  %1497 = vmatprep.subr.bf16.mxu1 %v1743_v23  ;;  %v1720_v31 = vld [vmem:[%s2278_s3 + $0x154] ss:$12 sps:$4 sm:$0xff]   ;;  %v1723_v34 = vld [vmem:[%s2278_s3 + $0x13c] ss:$12 sps:$4 sm:$0xff]   ;;  %v1751_v37 = vld [vmem:[%s2278_s3 + $0xf8] ss:$12 sps:$4 sm:$0xff]  }
  0x30   :  { %298 = vmatprep.subr.bf16.mxu0 %v1702_v6  ;;  %324 = vmatprep.mubr.bf16.mxu0 %v87_v22  ;;  %v1748_v33 = vld [vmem:[%s2278_s3 + $0x68] ss:$12 sps:$4 sm:$0xff]   ;;  %v1749_v35 = vld [vmem:[%s2278_s3 + $0x110] ss:$12 sps:$4 sm:$0xff]   ;;  %v1725_v38 = vld [vmem:[%s2278_s3 + $0x138] ss:$12 sps:$4 sm:$0xff]  }
  0x31   :  { %v1750_v36 = vld [vmem:[%s2278_s3 + $0x50] ss:$12 sps:$4 sm:$0xff]   ;;  %v1752_v40 = vld [vmem:[%s2278_s3 + $0x38] ss:$12 sps:$4 sm:$0xff]   ;;  %v1728_v41 = vld [vmem:[%s2278_s3 + $0x120] ss:$12 sps:$4 sm:$0xff]  }
  0x32   :  { %1498 = vmatpush3.bf16.msra.mxu1 %v1744_v24  ;;  %v1726_v39 = vld [vmem:[%s2278_s3 + $0x124] ss:$12 sps:$4 sm:$0xff]   ;;  %v1729_v42 = vld [vmem:[%s2278_s3 + $0x10c] ss:$12 sps:$4 sm:$0xff]   ;;  %v1731_v43 = vld [vmem:[%s2278_s3 + $0x108] ss:$12 sps:$4 sm:$0xff]  }
  0x33   :  { %299 = vmatpush1.bf16.msra.mxu0 %v1704_v8  ;;  %1499 = vmatprep.subr.bf16.mxu1 %v1745_v25  ;;  %v1732_v44 = vld [vmem:[%s2278_s3 + $0xf4] ss:$12 sps:$4 sm:$0xff]   ;;  %v1734_v45 = vld [vmem:[%s2278_s3 + $0xf0] ss:$12 sps:$4 sm:$0xff]   ;;  %v1737_v48 = vld [vmem:[%s2278_s3 + $0xd8] ss:$12 sps:$4 sm:$0xff]  }
  0x34   :  { %300 = vmatprep.subr.bf16.mxu0 %v1705_v9  ;;  %v1735_v46 = vld [vmem:[%s2278_s3 + $0xdc] ss:$12 sps:$4 sm:$0xff]   ;;  %v1738_v49 = vld [vmem:[%s2278_s3 + $0xc4] ss:$12 sps:$4 sm:$0xff]   ;;  %v1740_v51 = vld [vmem:[%s2278_s3 + $0xc0] ss:$12 sps:$4 sm:$0xff]  }
  0x35   :  { %v1753_v53 = vld [vmem:[%s2278_s3 + $0xe0] ss:$12 sps:$4 sm:$0xff]   ;;  %v1755_v55 = vld [vmem:[%s2278_s3 + $0xc8] ss:$12 sps:$4 sm:$0xff]   ;;  %v522_v8 = vld [vmem:[%s2279_s4 + $0x78] sm:$0xff]  ;;  %vm1837_vm0 = vmmov 0  }
  0x36   :  { %1500 = vmatpush3.bf16.msra.mxu1 %v1746_v28  ;;  %v1754_v54 = vld [vmem:[%s2278_s3 + $0x20] ss:$12 sps:$4 sm:$0xff]   ;;  %v1756_v56 = vld [vmem:[%s2278_s3 + $0x8] ss:$12 sps:$4 sm:$0xff]   ;;  %v510_v20 = vld [vmem:[%s2279_s4 + $0x18] sm:$0xff]  ;;  %vm604_vm1 = vcmask 523264  }
  0x37   :  { %301 = vmatpush1.bf16.msra.mxu0 %v1707_v11  ;;  %1501 = vmatprep.subr.bf16.mxu1 %v1747_v29  ;;  %v120_v58 = vld [vmem:[#allocation6] ss:$8 sm:$0x3]  ;;  %v519_v11 = vld [vmem:[%s2279_s4 + $0x60] sm:$0xff]  ;;  %v602_v24 = vld [vmem:[%s2279_s4 + $0xb8] sm:$0xff]  ;;  %vm682_vm2 = vcmask 130048  }
  0x38   :  { %302 = vmatprep.subr.bf16.mxu0 %v1708_v12  ;;  %v285_v59 = vrot.slane %v120_v58, %v2034_v47  ;;  %v289_v60 = vrot.slane %v120_v58, %v82_v13  ;;  %v521_v9 = vld [vmem:[%s2279_s4 + $0x70] sm:$0xff]  ;;  %v520_v10 = vld [vmem:[%s2279_s4 + $0x68] sm:$0xff]  ;;  %v518_v12 = vld [vmem:[%s2279_s4 + $0x58] sm:$0xff]  ;;  %vm927_vm3 = vcmask 261120   ;;  %vm760_vm5 = vcmask 1040384  }
  0x39   :  { %v517_v13 = vld [vmem:[%s2279_s4 + $0x50] sm:$0xff]  ;;  %v511_v19 = vld [vmem:[%s2279_s4 + $0x20] sm:$0xff]  ;;  %v508_v22 = vld [vmem:[%s2279_s4 + $0x8] sm:$0xff]  ;;  %vm1171_vm6 = vcmask 64512   ;;  %vm1252_vm7 = vcmask 1043456   ;;  %vm1248_vm8 = vcmask 31744  }
  0x3a   :  { %1502 = vmatpush3.bf16.msra.mxu1 %v1748_v33  ;;  %v513_v17 = vld [vmem:[%s2279_s4 + $0x30] sm:$0xff]  ;;  %v507_v23 = vld [vmem:[%s2279_s4] sm:$0xff]  ;;  %v598_v28 = vld [vmem:[%s2279_s4 + $0x98] sm:$0xff]  ;;  %vm1333_vm9 = vcmask 1041408   ;;  %vm1329_vm10 = vcmask 15360  }
  0x3b   :  { %303 = vmatpush1.bf16.msra.mxu0 %v1710_v14  ;;  %1503 = vmatprep.subr.bf16.mxu1 %v1749_v35  ;;  %v516_v14 = vld [vmem:[%s2279_s4 + $0x48] sm:$0xff]  ;;  %v509_v21 = vld [vmem:[%s2279_s4 + $0x10] sm:$0xff]  ;;  %v915_v58 = vld [vmem:[%s2283_s8 + $0x20] sm:$0xff] }
  0x3c   :  { %304 = vmatprep.subr.bf16.mxu0 %v1711_v15  ;;  %v515_v15 = vld [vmem:[%s2279_s4 + $0x40] sm:$0xff]  ;;  %v601_v25 = vld [vmem:[%s2279_s4 + $0xb0] sm:$0xff] }
  0x3e   :  { %1504 = vmatpush3.bf16.msra.mxu1 %v1750_v36 }
  0x3f   :  { %305 = vmatpush1.bf16.msra.mxu0 %v1713_v16  ;;  %1505 = vmatprep.subr.bf16.mxu1 %v1751_v37  ;;  %v514_v16 = vld [vmem:[%s2279_s4 + $0x38] sm:$0xff]  ;;  %v597_v37 = vld [vmem:[%s2279_s4 + $0x90] sm:$0xff] }
  0x40   :  { %306 = vmatprep.subr.bf16.mxu0 %v1714_v18  ;;  %v512_v18 = vld [vmem:[%s2279_s4 + $0x28] sm:$0xff] }
  0x42   :  { %1506 = vmatpush3.bf16.msra.mxu1 %v1752_v40  ;;  %v523_v40 = vld [vmem:[#allocation6 + $0x2] ss:$0 sm:$0xff] }
  0x43   :  { %307 = vmatpush1.bf16.msra.mxu0 %v1716_v26  ;;  %1507 = vmatprep.subr.bf16.mxu1 %v1753_v53  ;;  %v600_v26 = vld [vmem:[%s2279_s4 + $0xa8] sm:$0xff] }
  0x44   :  { %308 = vmatprep.subr.bf16.mxu0 %v1717_v27  ;;  %v599_v27 = vld [vmem:[%s2279_s4 + $0xa0] sm:$0xff]  ;;  %v789_v53 = vld [vmem:[%s2283_s8 + $0x8] sm:$0xff] }
  0x46   :  { %1508 = vmatpush3.bf16.msra.mxu1 %v1754_v54  ;;  %v790_v54 = vld [vmem:[%s2283_s8 + $0x10] sm:$0xff] }
  0x47   :  { %309 = vmatpush2.bf16.msra.mxu0 %v1719_v30  ;;  %1509 = vmatprep.subr.bf16.mxu1 %v1755_v55  ;;  %v369_v30 = vld [vmem:[#allocation6 + $0x1] ss:$0 sm:$0xff]  ;;  %v788_v55 = vld [vmem:[%s2283_s8] sm:$0xff] }
  0x48   :  { %310 = vmatprep.subr.bf16.mxu0 %v1720_v31 }
  0x4a   :  { %1510 = vmatpush3.bf16.msra.mxu1 %v1756_v56  ;;  %v916_v56 = vld [vmem:[%s2283_s8 + $0x28] sm:$0xff] }
  0x4b   :  { %311 = vmatpush2.bf16.msra.mxu0 %v1722_v32  ;;  %1570 = vmatprep.subr.mxu1 %v1836_v57 }
  0x4c   :  { %312 = vmatprep.subr.bf16.mxu0 %v1723_v34 }
  0x4f   :  { %313 = vmatpush2.bf16.msra.mxu0 %v1725_v38  ;;  %v596_v38 = vld [vmem:[%s2279_s4 + $0x88] sm:$0xff] }
  0x50   :  { %314 = vmatprep.subr.bf16.mxu0 %v1726_v39  ;;  %v595_v39 = vld [vmem:[%s2279_s4 + $0x80] sm:$0xff] }
  0x53   :  { %315 = vmatpush2.bf16.msra.mxu0 %v1728_v41 }
  0x54   :  { %316 = vmatprep.subr.bf16.mxu0 %v1729_v42 }
  0x57   :  { %317 = vmatpush2.bf16.msra.mxu0 %v1731_v43 }
  0x58   :  { %318 = vmatprep.subr.bf16.mxu0 %v1732_v44 }
  0x5b   :  { %319 = vmatpush2.bf16.msra.mxu0 %v1734_v45  ;;  %v680_v45 = vld [vmem:[#allocation4 + $0x8] sm:$0xff] }
  0x5c   :  { %320 = vmatprep.subr.bf16.mxu0 %v1735_v46  ;;  %v774_v46 = vld [vmem:[#allocation2 + $0x8] sm:$0xff] }
  0x5f   :  { %321 = vmatpush2.bf16.msra.mxu0 %v1737_v48  ;;  %v1481_v48 = vld [vmem:[%s2277_s2] ss:$0 sm:$0xff] }
  0x60   :  { %322 = vmatprep.subr.bf16.mxu0 %v1738_v49  ;;  %v679_v49 = vld [vmem:[#allocation4] sm:$0xff]  ;;  %v783_v50 = vmul.f32 %v1481_v48, %v774_v46 }
  0x63   :  { %323 = vmatpush2.bf16.msra.mxu0 %v1740_v51  ;;  %v791_v51 = vld [vmem:[%s2283_s8 + $0x18] sm:$0xff] }
  0x64   :  { %1605 = vmatprep.subr.mxu0 %v1836_v57 }
  0x66   :  { %325 = vmatmul.mubr.bf16.vlgmr.msra.gmra.mxu0 %v86_v52  ;;  %v1838_v52 = vmov 0  }
  0x67   :  { %1621 = vmatprep.mubr.msk.f32.mxu0 %vm1837_vm0, %v1836_v57  ;;  %1606 = vmatpush3.msra.mxu0 %v602_v24 }
  0x68   :  { %1607 = vmatprep.subr.mxu0 %v1836_v57  ;;  %1691 = vset.pattern.permute.xlu0 %v1838_v52 }
  0x69   :  { %1608 = vmatpush3.msra.mxu0 %v601_v25  ;;  %1692 = vset.pattern.permute.xlu1 %v1838_v52 }
  0x6a   :  { %1609 = vmatprep.subr.mxu0 %v1836_v57  ;;  %809 = vperm.xlu0 %1691, %v791_v51  }
  0x6b   :  { %1610 = vmatpush3.msra.mxu0 %v600_v26  ;;  %799 = vperm.xlu1 %1692, %v789_v53  }
  0x6c   :  { %1611 = vmatprep.subr.mxu0 %v1836_v57 }
  0x6d   :  { %1612 = vmatpush3.msra.mxu0 %v599_v27 }
  0x6e   :  { %1613 = vmatprep.subr.mxu0 %v1836_v57  ;;  %804 = vperm.xlu0 %1691, %v790_v54  }
  0x6f   :  { %1614 = vmatpush3.msra.mxu0 %v598_v28  ;;  %794 = vperm.xlu1 %1692, %v788_v55   ;;  %v1246_v55 = vld [vmem:[%s2281_s6 + $0x50] sm:$0xf] }
  0x70   :  { %1615 = vmatprep.subr.mxu0 %v1836_v57 }
  0x71   :  { %1616 = vmatpush3.msra.mxu0 %v597_v37 }
  0x72   :  { %1617 = vmatprep.subr.mxu0 %v1836_v57  ;;  %924 = vperm.xlu0 %1691, %v916_v56   ;;  %v1170_v56 = vld [vmem:[#allocation6 + $0x6] ss:$0 sm:$0xff] }
  0x73   :  { %1618 = vmatpush3.msra.mxu0 %v596_v38  ;;  %919 = vperm.xlu1 %1692, %v915_v58  }
  0x74   :  { %1619 = vmatprep.subr.mxu0 %v1836_v57 }
  0x75   :  { %1620 = vmatpush3.msra.mxu0 %v595_v39 }
  0x76   :  { %1652 = vmatprep.subr.mxu0 %v1836_v57 }
 0x126   :  { %v326_v61 = vpop.f32.mrf.mxu0 }
 0x127   :  { %v327_v62 = vadd.f32 %v326_v61, %v285_v59  ;;  %v1012_v59 = vld [vmem:[%s2283_s8 + $0x30] sm:$0xff] }
 0x128   :  { %v328_v63 = vpop.f32.mrf.mxu0  ;;  %1015 = vperm.xlu0 %1691, %v1012_v59  }
 0x129   :  { %v329_v0 = vadd.f32 %v328_v63, %v289_v60  ;;  %v333_v1 = vmax.f32 %v327_v62, 0.0  ;;  %v603_v60 = vld [vmem:[#allocation6 + $0x3] ss:$0 sm:$0xff]  ;;  %v773_v62 = vld [vmem:[#allocation2] sm:$0xff] }
 0x12a   :  { %v330_v2 = vpop.f32.mrf.mxu0 }
 0x12b   :  { %v334_v3 = vmax.f32 %v329_v0, 0.0  ;;  %v335_v6 = vpack.c.bf16 %v333_v1, %v333_v1  ;;  %v782_v2 = vmul.f32 %v1481_v48, %v773_v62  ;;  %v1327_v62 = vld [vmem:[#allocation4 + $0x10] sm:$0x3] }
 0x12c   :  { %v331_v4 = vpop.f32.mrf.mxu0 }
 0x12d   :  { %v336_v5 = vpack.c.bf16 %v334_v3, %v334_v3  ;;  %v784_v3 = vld [vmem:[%s2281_s6] sm:$0xff]  ;;  %v785_v4 = vld [vmem:[%s2281_s6 + $0x8] sm:$0xff] }
 0x12f   :  { %498 = vmatprep.mubr.bf16.mxu1 %v336_v5  ;;  %v786_v5 = vld [vmem:[%s2281_s6 + $0x10] sm:$0xff] }
 0x130   :  { %499 = vmatmul.mubr.bf16.vlgmr.msra.gmra.mxu1 %v335_v6  ;;  %v787_v6 = vld [vmem:[%s2281_s6 + $0x18] sm:$0xff] }
 0x131   :  { %1571 = vmatpush3.msra.mxu1 %v522_v8  ;;  %1602 = vmatprep.mubr.msk.f32.mxu1 %vm1837_vm0, %v1836_v57  ;;  %v913_v8 = vld [vmem:[%s2281_s6 + $0x20] sm:$0xff] }
 0x132   :  { %1572 = vmatprep.subr.mxu1 %v1836_v57 }
 0x133   :  { %1573 = vmatpush3.msra.mxu1 %v521_v9  ;;  %v2215_v9 = vand.u32 127, %v76_v7 }
 0x134   :  { %1574 = vmatprep.subr.mxu1 %v1836_v57 }
 0x135   :  { %1575 = vmatpush3.msra.mxu1 %v520_v10  ;;  %v681_v10 = vld [vmem:[#allocation6 + $0x4] ss:$0 sm:$0xff]  ;;  %vm758_vm4 = vcmp.lt.s32.totalorder %v2215_v9, 6  ;;  %vm1407_vm11 = vcmp.lt.s32.totalorder %v2215_v9, 10 }
 0x136   :  { %1576 = vmatprep.subr.mxu1 %v1836_v57 }
 0x137   :  { %1577 = vmatpush3.msra.mxu1 %v519_v11 }
 0x138   :  { %1578 = vmatprep.subr.mxu1 %v1836_v57 }
 0x139   :  { %1579 = vmatpush3.msra.mxu1 %v518_v12 }
 0x13a   :  { %1580 = vmatprep.subr.mxu1 %v1836_v57 }
 0x13b   :  { %1581 = vmatpush3.msra.mxu1 %v517_v13 }
 0x13c   :  { %1582 = vmatprep.subr.mxu1 %v1836_v57 }
 0x13d   :  { %1583 = vmatpush3.msra.mxu1 %v516_v14  ;;  %v810_v14 = vpop.permute.xlu0 %809 }
 0x13e   :  { %1584 = vmatprep.subr.mxu1 %v1836_v57 }
 0x13f   :  { %1585 = vmatpush3.msra.mxu1 %v515_v15 }
 0x140   :  { %1586 = vmatprep.subr.mxu1 %v1836_v57 }
 0x141   :  { %1587 = vmatpush3.msra.mxu1 %v514_v16  ;;  %v800_v16 = vpop.permute.xlu1 %799 }
 0x142   :  { %1588 = vmatprep.subr.mxu1 %v1836_v57 }
 0x143   :  { %1589 = vmatpush3.msra.mxu1 %v513_v17 }
 0x144   :  { %1590 = vmatprep.subr.mxu1 %v1836_v57 }
 0x145   :  { %1591 = vmatpush3.msra.mxu1 %v512_v18 }
 0x146   :  { %1592 = vmatprep.subr.mxu1 %v1836_v57 }
 0x147   :  { %1593 = vmatpush3.msra.mxu1 %v511_v19 }
 0x148   :  { %1594 = vmatprep.subr.mxu1 %v1836_v57 }
 0x149   :  { %1595 = vmatpush3.msra.mxu1 %v510_v20  ;;  %v805_v20 = vpop.permute.xlu0 %804 }
 0x14a   :  { %1596 = vmatprep.subr.mxu1 %v1836_v57 }
 0x14b   :  { %1597 = vmatpush3.msra.mxu1 %v509_v21 }
 0x14c   :  { %1598 = vmatprep.subr.mxu1 %v1836_v57 }
 0x14d   :  { %1599 = vmatpush3.msra.mxu1 %v508_v22  ;;  %v795_v22 = vpop.permute.xlu1 %794 }
 0x14e   :  { %1600 = vmatprep.subr.mxu1 %v1836_v57 }
 0x14f   :  { %1601 = vmatpush3.msra.mxu1 %v507_v23 }
 0x150   :  { %1624 = vmatprep.subr.mxu1 %v1836_v57 }
 0x1f0   :  { %v1511_v29 = vpop.f32.mrf.mxu1 }
 0x1f2   :  { %v1512_v31 = vpop.f32.mrf.mxu1 }
 0x1f3   :  { %v1513_v32 = vadd.f32 %v1512_v31, %v1511_v29  ;;  %v914_v31 = vld [vmem:[%s2281_s6 + $0x28] sm:$0xff] }
 0x1f4   :  { %v1514_v33 = vpop.f32.mrf.mxu1 }
 0x1f5   :  { %v501_v34 = vadd.f32 %v1513_v32, %v369_v30  ;;  %v925_v32 = vpop.permute.xlu0 %924 }
 0x1f6   :  { %v1515_v35 = vpop.f32.mrf.mxu1 }
 0x1f7   :  { %v506_v36 = vmax.f32 %v501_v34, 0.0  ;;  %v920_v35 = vpop.permute.xlu1 %919 }
 0x1f9   :  { %1603 = vmatmul.mubr.f32.vlgmr.msra.gmra.mxu1 %v506_v36 }
 0x1fa   :  { %1628 = vmatprep.mubr.msk.f32.mxu1 %vm1837_vm0, %v1836_v57  ;;  %1625 = vmatpush3.msra.mxu1 %v680_v45 }
 0x1fb   :  { %1626 = vmatprep.subr.mxu1 %v1836_v57 }
 0x1fc   :  { %1627 = vmatpush3.msra.mxu1 %v679_v49  ;;  %v1169_v49 = vld [vmem:[%s2281_s6 + $0x48] sm:$0xff] }
 0x1fd   :  { %1631 = vmatprep.subr.mxu1 %v783_v50 }
 0x2b9   :  { %v590_v41 = vpop.f32.mrf.mxu1 }
 0x2ba   :  { %v591_v42 = vadd.f32 %v590_v41, %v523_v40  ;;  %v1011_v40 = vld [vmem:[%s2281_s6 + $0x30] sm:$0xff]  ;;  %v1093_v41 = vld [vmem:[%s2281_s6 + $0x40] sm:$0xff] }
 0x2bb   :  { %v1604_v43 = vpop.f32.mrf.mxu1 }
 0x2bc   :  { %v594_v44 = vmax.f32 %v591_v42, 0.0  ;;  %v1092_v42 = vld [vmem:[%s2281_s6 + $0x38] sm:$0xff]  ;;  %v1016_v43 = vpop.permute.xlu0 %1015 }
 0x2be   :  { %1622 = vmatmul.mubr.msk.f32.vlgmr.msra.gmra.mxu0 %vm604_vm1, %v594_v44 }
 0x2bf   :  { %1656 = vmatprep.mubr.msk.f32.mxu0 %vm1837_vm0, %v1836_v57 }
 0x37e   :  { %v674_v61 = vpop.f32.mrf.mxu0 }
 0x37f   :  { %v675_v63 = vadd.f32 %v674_v61, %v603_v60 }
 0x380   :  { %v1623_v0 = vpop.f32.mrf.mxu0 }
 0x381   :  { %v678_v1 = vmax.f32 %v675_v63, 0.0  ;;  %v1247_v63 = vld [vmem:[#allocation6 + $0x7] ss:$0 sm:$0xff] }
 0x383   :  { %1629 = vmatmul.mubr.msk.f32.vlgmr.msra.gmra.mxu1 %vm682_vm2, %v678_v1 }
 0x384   :  { %1632 = vmatpush3.msra.mxu1 %v783_v50  ;;  %1635 = vmatprep.mubr.msk.f32.mxu1 %vm682_vm2, %v784_v3  ;;  %v1094_v50 = vld [vmem:[#allocation6 + $0x5] ss:$0 sm:$0xff] }
 0x385   :  { %1633 = vmatprep.subr.mxu1 %v782_v2 }
 0x386   :  { %1634 = vmatpush3.msra.mxu1 %v782_v2 }
 0x387   :  { %1636 = vmatmul.mubr.msk.f32.vlgmr.msra.gmra.mxu1 %vm682_vm2, %v785_v4 }
 0x388   :  { %1638 = vmatprep.mubr.msk.f32.mxu1 %vm682_vm2, %v786_v5 }
 0x38b   :  { %1639 = vmatmul.mubr.msk.f32.gmra.mxu1 %vm682_vm2, %v787_v6  ;;  %v1328_v6 = vld [vmem:[#allocation6 + $0x10] ss:$0 sm:$0xff] }
 0x38c   :  { %1649 = vmatprep.mubr.msk.f32.mxu1 %vm927_vm3, %v913_v8 }
 0x443   :  { %v752_v11 = vpop.f32.mrf.mxu1 }
 0x444   :  { %v2218_v12 = vadd.f32 %v752_v11, %v681_v10 }
 0x445   :  { %v1630_v13 = vpop.f32.mrf.mxu1 }
 0x446   :  { %v759_v15 = vsel %vm758_vm4, %v2218_v12, -1e+30 }
 0x447   :  { %v1637_v17 = vpop.f32.mrf.mxu1  ;;  %v761_v18 = vsel %vm760_vm5, %v759_v15, -inf }
 0x448   :  { %762 = vmax.xlane.f32.xlu1 %v761_v18  ;;  %v896_v24 = vadd.f32 %v1637_v17, %v800_v16 }
 0x449   :  { %v890_v7 = vpop.f32.mrf.mxu1 }
 0x44a   :  { %v891_v27 = vadd.f32 %v890_v7, %v795_v22  ;;  %v910_v29 = vmax.f32 %v896_v24, 0.0 }
 0x44b   :  { %v1640_v19 = vpop.f32.mrf.mxu1 }
 0x44c   :  { %v906_v21 = vadd.f32 %v1640_v19, %v810_v14  ;;  %v909_v30 = vmax.f32 %v891_v27, 0.0 }
 0x44d   :  { %v900_v23 = vpop.f32.mrf.mxu1 }
 0x44e   :  { %v912_v25 = vmax.f32 %v906_v21, 0.0  ;;  %v901_v26 = vadd.f32 %v900_v23, %v805_v20 }
 0x450   :  { %v911_v28 = vmax.f32 %v901_v26, 0.0  ;;  %1641 = vmatprep.subr.mxu1 %v912_v25 }
 0x451   :  { %1642 = vmatpush3.msra.mxu1 %v912_v25 }
 0x452   :  { %1643 = vmatprep.subr.mxu1 %v911_v28 }
 0x453   :  { %1644 = vmatpush3.msra.mxu1 %v911_v28 }
 0x454   :  { %1645 = vmatprep.subr.mxu1 %v910_v29 }
 0x455   :  { %1646 = vmatpush3.msra.mxu1 %v910_v29 }
 0x456   :  { %1647 = vmatprep.subr.mxu1 %v909_v30 }
 0x457   :  { %1648 = vmatpush3.msra.mxu1 %v909_v30 }
 0x458   :  { %1650 = vmatmul.mubr.msk.f32.vlgmr.msra.gmra.mxu1 %vm927_vm3, %v914_v31  ;;  %1659 = vmatprep.subr.mxu1 %v1836_v57 }
 0x459   :  { %1663 = vmatprep.mubr.msk.f32.mxu1 %vm1837_vm0, %v1836_v57  ;;  %1660 = vmatpush3.msra.mxu1 %v1093_v41 }
 0x45a   :  { %1661 = vmatprep.subr.mxu1 %v1836_v57 }
 0x45b   :  { %1662 = vmatpush3.msra.mxu1 %v1092_v42 }
 0x45c   :  { %1671 = vmatprep.subr.mxu1 %v1836_v57 }
 0x4d1   :  { %v763_v3 = vpop.xlane.xlu1 %762 }
 0x4d2   :  { %v764_v4 = vsub.f32 %v2218_v12, %v763_v3 }
 0x4d4   :  { %v765_v5 = vmul.f32 1.442695, %v764_v4 }
 0x4d6   :  { %1757 = vpow2.f32 %v765_v5 }
 0x4e3   :  { %v1758_v10 = vpop.eup %1757 }
 0x4e4   :  { %v767_v15 = vsel %vm758_vm4, %v1758_v10, 0.0 }
 0x4e5   :  { %v768_v16 = vsel %vm760_vm5, %v767_v15, 0.0 }
 0x518   :  { %v1651_v33 = vpop.f32.mrf.mxu1 }
 0x519   :  { %v1006_v34 = vadd.f32 %v1651_v33, %v925_v32 }
 0x51a   :  { %v1000_v36 = vpop.f32.mrf.mxu1 }
 0x51b   :  { %v1010_v37 = vmax.f32 %v1006_v34, 0.0  ;;  %v1001_v38 = vadd.f32 %v1000_v36, %v920_v35 }
 0x51d   :  { %v1009_v39 = vmax.f32 %v1001_v38, 0.0  ;;  %1653 = vmatpush3.msra.mxu0 %v1010_v37 }
 0x51e   :  { %1654 = vmatprep.subr.mxu0 %v1836_v57 }
 0x51f   :  { %1655 = vmatpush3.msra.mxu0 %v1009_v39 }
 0x520   :  { %1657 = vmatmul.mubr.msk.f32.vlgmr.msra.gmra.mxu0 %vm682_vm2, %v1011_v40  ;;  %1666 = vmatprep.subr.mxu0 %v1836_v57 }
 0x521   :  { %1668 = vmatprep.mubr.msk.f32.mxu0 %vm1837_vm0, %v1836_v57  ;;  %1667 = vmatpush3.msra.mxu0 %v1169_v49 }
 0x522   :  { %1676 = vmatprep.subr.mxu0 %v1836_v57 }
 0x5e0   :  { %v1087_v44 = vpop.f32.mrf.mxu0 }
 0x5e1   :  { %v1088_v45 = vadd.f32 %v1087_v44, %v1016_v43 }
 0x5e2   :  { %v1658_v46 = vpop.f32.mrf.mxu0 }
 0x5e3   :  { %v1091_v48 = vmax.f32 %v1088_v45, 0.0 }
 0x5e5   :  { %1664 = vmatmul.mubr.msk.f32.vlgmr.msra.gmra.mxu1 %vm682_vm2, %v1091_v48 }
 0x5e6   :  { %1673 = vmatprep.mubr.msk.f32.mxu1 %vm1837_vm0, %v1836_v57  ;;  %1672 = vmatpush3.msk.msra.mxu1 %vm1252_vm7, %v1246_v55 }
 0x6a5   :  { %v1164_v51 = vpop.f32.mrf.mxu1 }
 0x6a6   :  { %v1165_v52 = vadd.f32 %v1164_v51, %v1094_v50 }
 0x6a7   :  { %v1665_v53 = vpop.f32.mrf.mxu1 }
 0x6a8   :  { %v1168_v54 = vmax.f32 %v1165_v52, 0.0 }
 0x6aa   :  { %1669 = vmatmul.mubr.msk.f32.vlgmr.msra.gmra.mxu0 %vm1171_vm6, %v1168_v54 }
 0x6ab   :  { %1678 = vmatprep.mubr.msk.f32.mxu0 %vm1837_vm0, %v1836_v57  ;;  %1677 = vmatpush3.msk.msra.mxu0 %vm1333_vm9, %v1327_v62 }
 0x76a   :  { %v1241_v58 = vpop.f32.mrf.mxu0 }
 0x76b   :  { %v1242_v59 = vadd.f32 %v1241_v58, %v1170_v56 }
 0x76c   :  { %v1670_v60 = vpop.f32.mrf.mxu0 }
 0x76d   :  { %v1245_v61 = vmax.f32 %v1242_v59, 0.0 }
 0x76f   :  { %1674 = vmatmul.mubr.msk.f32.vlgmr.msra.gmra.mxu1 %vm1248_vm8, %v1245_v61 }
 0x82f   :  { %v1322_v0 = vpop.f32.mrf.mxu1 }
 0x830   :  { %v1323_v1 = vadd.f32 %v1322_v0, %v1247_v63 }
 0x831   :  { %v1675_v57 = vpop.f32.mrf.mxu1 }
 0x832   :  { %v1326_v2 = vmax.f32 %v1323_v1, 0.0 }
 0x834   :  { %1679 = vmatmul.mubr.msk.f32.vlgmr.msra.gmra.mxu0 %vm1329_vm10, %v1326_v2 }
 0x8f4   :  { %v1403_v8 = vpop.f32.mrf.mxu0 }
 0x8f5   :  { %v1404_v11 = vadd.f32 %v1403_v8, %v1328_v6 }
 0x8f6   :  { %v1680_v13 = vpop.f32.mrf.mxu0 }
 0x8f7   :  { %v1408_v14 = vsel %vm1407_vm11, %v1404_v11, -1e+30 }
 0x8f8   :  { %1409 = vmax.xlane.f32.xlu0 %v1408_v14 }
 0x8fc   :  { %769 = vadd.xlane.f32.xlu0 %v768_v16 }
 0x981   :  { %v1410_v12 = vpop.xlane.xlu0 %1409 }
 0x982   :  { %v1411_v17 = vsub.f32 %v1404_v11, %v1410_v12 }
 0x984   :  { %v1412_v18 = vmul.f32 1.442695, %v1411_v17 }
 0x985   :  { %v770_v7 = vpop.xlane.xlu0 %769 }
 0x986   :  { %1759 = vpow2.f32 %v1412_v18 }
 0x987   :  { %1761 = vrcp.f32 %v770_v7 }
 0x993   :  { %v1760_v19 = vpop.eup %1759 }
 0x994   :  { %v1762_v20 = vpop.eup %1761  ;;  %v1414_v21 = vsel %vm1407_vm11, %v1760_v19, 0.0 }
 0x995   :  { %v772_v22 = vmul.f32 %v1762_v20, %v767_v15  ;;  %1415 = vadd.xlane.f32.xlu1 %v1414_v21 }
 0x997   :  { %v1423_v23 = vrot.slane %v772_v22, %v2034_v47 }
 0x999   :  { %1424 = vst [vmem:[%s2284_s9 + $0x8] sm:$0xff] %v1423_v23 }
 0xa1e   :  { %v1416_v24 = vpop.xlane.xlu1 %1415 }
 0xa1f   :  { %1763 = vrcp.f32 %v1416_v24 }
 0xa2c   :  { %v1764_v25 = vpop.eup %1763 }
 0xa2d   :  { %v1418_v26 = vmul.f32 %v1764_v25, %v1414_v21 }
 0xa2f   :  { %1419 = vst [vmem:[%s2284_s9] sm:$0xff] %v1418_v26 }
 0xa30   :  { %1429 = vsyncpa [#allocation3], 1 }
 0xa31   :  { %1430 = vsyncpa [#allocation5], 1 }

</bundles_post_ra>
